<compile_context>
chip_gen: v7x
topology: tpu7x:2x2x1
jax: 0.10.0
libtpu: 0.0.40
codegen_flags: <defaults>
</compile_context>

<pallas_src>
import jax
import jax.numpy as jnp
import numpy as np
from jax import lax
from jax.experimental import pallas as pl
from jax.experimental.pallas import tpu as pltpu

LANE = 128
SUBLANE = 8
MAX_BLOCK_ROWS = 4096        # (4096,128) f32 block = 2 MiB per stream buffer
PAD_LOGIT = -1e9             # sigmoid(-1e9) == 0.0 exactly in f32
VMEM_LIMIT_BYTES = 48 * 1024 * 1024


def _num_tensorcores():
    """How many TensorCores a single 'parallel' grid axis can span.

    v4 (megacore) and v7x expose 2 TCs to one Pallas call; v2/v3/v5e/v5p/v6e
    expose 1 per device.  Falling back to 1 is always correct."""
    try:
        kind = jax.devices()[0].device_kind.lower()
    except Exception:
        return 1
    return 2 if ("v7" in kind or "v4" in kind) else 1


def _make_kernel(block_rows, rows, tiles_per_shard, need_mask):
    """Build the kernel body specialized for the static geometry."""

    def kernel(x_ref, t_ref, out_ref, acc_s, acc_pt, acc_bce):
        c = pl.program_id(0)   # core shard (parallel)
        j = pl.program_id(1)   # tile within shard (reduction axis)

        @pl.when(j == 0)
        def _init():
            acc_s[...] = jnp.zeros_like(acc_s)
            acc_pt[...] = jnp.zeros_like(acc_pt)
            acc_bce[...] = jnp.zeros_like(acc_bce)

        def blk_sum(v):
            # (block_rows,128) -> (8,128): tile-aligned reshape + pure vreg
            # adds; accumulator RMW traffic stays constant as blocks grow.
            return jnp.sum(v.reshape(block_rows // SUBLANE, SUBLANE, LANE),
                           axis=0)

        def accumulate(x, t):
            # Shared-exp stable sigmoid/BCE: 1 exp + 1 log1p + 1 div on EUP.
            r = jnp.maximum(x, 0.0)                  # relu(x)
            a = jnp.exp(x - r - r)                   # exp(-|x|)
            L = jnp.log1p(a)                         # softplus(-|x|)
            # torch.binary_cross_entropy clamps the log terms at -100.
            log_1mp = jnp.maximum(-(r + L), -100.0)  # log(1 - sigmoid(x))
            log_p = jnp.maximum(x - r - L, -100.0)   # log(sigmoid(x))
            p = jnp.where(x >= 0.0, 1.0, a) / (1.0 + a)   # sigmoid(x)
            # Un-negated BCE element; negated once in the wrapper.
            bce_un = log_1mp + t * (log_p - log_1mp)
            acc_s[...] += blk_sum(p + t)     # sum(p) + sum(t), folded
            acc_pt[...] += blk_sum(p * t)    # intersection
            acc_bce[...] += blk_sum(bce_un)  # -(BCE numerator)

        if need_mask:
            # Only the (statically reachable) boundary tile — the partial
            # final tile and/or clamped-index over-shard duplicates — pays
            # for the row mask; interior tiles take the unmasked fast path.
            tile = c * tiles_per_shard + j
            is_boundary = (tile + 1) * block_rows > rows

            @pl.when(jnp.logical_not(is_boundary))
            def _interior():
                accumulate(x_ref[...].astype(jnp.float32),
                           t_ref[...].astype(jnp.float32))

            @pl.when(is_boundary)
            def _boundary():
                x = x_ref[...].astype(jnp.float32)
                t = t_ref[...].astype(jnp.float32)
                row_ids = tile * block_rows + lax.broadcasted_iota(
                    jnp.int32, (block_rows, LANE), 0)
                valid = row_ids < rows
                accumulate(jnp.where(valid, x, PAD_LOGIT),
                           jnp.where(valid, t, 0.0))
        else:
            accumulate(x_ref[...].astype(jnp.float32),
                       t_ref[...].astype(jnp.float32))

        @pl.when(j == pl.num_programs(1) - 1)
        def _finalize():
            out_ref[0, 0] = acc_s[...]
            out_ref[0, 1] = acc_pt[...]
            out_ref[0, 2] = acc_bce[...]

    return kernel


@jax.jit
def dice_bce_loss(inputs, targets, smooth=1.0):
    """Equivalent of DiceBCELoss.forward(inputs, targets, smooth)."""
    x = inputs.reshape(-1)
    t = targets.reshape(-1)
    n = x.shape[0]
    if n == 0:
        # torch: BCE mean over an empty tensor is NaN (dice term would be 0).
        return jnp.asarray(jnp.nan, dtype=jnp.float32)

    # Lossless narrowing of the target stream: bool/integer masks hold exact
    # small values -> stream as bf16 (halves HBM bytes for t on v5e/v6e).
    if (jnp.issubdtype(t.dtype, jnp.bool_)
            or jnp.issubdtype(t.dtype, jnp.integer)):
        t = t.astype(jnp.bfloat16)

    # Lane-dense 2-D view.  When n % 128 == 0 (the common case) this reshape
    # is a free bitcast — no padded copy is materialized.  Otherwise pad only
    # to the next multiple of 128 with values whose contribution is exactly
    # zero (sigmoid(-1e9)==0, t==0, clamped-BCE term == 0).
    pad = (-n) % LANE
    if pad:
        # TODO(synk): element-granular in-kernel tail handling would avoid
        # this one full copy of each flattened tensor for unaligned n.
        x = jnp.pad(x, (0, pad), constant_values=PAD_LOGIT)
        t = jnp.pad(t, (0, pad), constant_values=0)
    rows = (n + pad) // LANE
    x2 = x.reshape(rows, LANE)
    t2 = t.reshape(rows, LANE)

    # Block geometry: block_rows is always a multiple of 8; a partial final
    # block (rows % block_rows != 0 or rows < 8) is handled by the in-kernel
    # boundary mask rather than by host-side padding.
    rows_up8 = ((rows + SUBLANE - 1) // SUBLANE) * SUBLANE
    block_rows = min(MAX_BLOCK_ROWS, rows_up8)
    total_tiles = -(-rows // block_rows)

    n_shards = max(1, min(_num_tensorcores(), total_tiles))
    tiles_per_shard = -(-total_tiles // n_shards)
    need_mask = (n_shards * tiles_per_shard * block_rows) != rows

    def in_index(c, j):
        # Clamp so over-sharded steps re-read the last valid tile (their
        # contribution is fully masked to zero in-kernel).
        tile = jnp.minimum(c * tiles_per_shard + j, total_tiles - 1)
        return (tile, 0)

    tile_spec = pl.BlockSpec((block_rows, LANE), in_index)
    kernel = _make_kernel(block_rows, rows, tiles_per_shard, need_mask)

    partials = pl.pallas_call(
        kernel,
        out_shape=jax.ShapeDtypeStruct((n_shards, 3, SUBLANE, LANE),
                                       jnp.float32),
        grid=(n_shards, tiles_per_shard),
        in_specs=[tile_spec, tile_spec],
        out_specs=pl.BlockSpec((1, 3, SUBLANE, LANE),
                               lambda c, j: (c, 0, 0, 0)),
        scratch_shapes=[pltpu.VMEM((SUBLANE, LANE), jnp.float32)] * 3,
        compiler_params=pltpu.CompilerParams(
            dimension_semantics=("parallel", "arbitrary"),
            vmem_limit_bytes=VMEM_LIMIT_BYTES),
    )(x2, t2)

    # Tiny final combine (3 * n_shards * 1024 floats) in plain JAX.
    sums = jnp.sum(partials, axis=(0, 2, 3))
    s, inter, bce_un_sum = sums[0], sums[1], sums[2]
    dice_loss = 1.0 - (2.0 * inter + smooth) / (s + smooth)
    bce = -bce_un_sum / n
    return bce + dice_loss


def _reference(inputs, targets, smooth=1.0):
    # Mirrors torch: sigmoid, then binary_cross_entropy with -100 log clamp.
    p = jax.nn.sigmoid(inputs.reshape(-1).astype(jnp.float32))
    t = targets.reshape(-1).astype(jnp.float32)
    inter = jnp.sum(p * t)
    dice = 1.0 - (2.0 * inter + smooth) / (jnp.sum(p) + jnp.sum(t) + smooth)
    bce = jnp.mean(-(t * jnp.maximum(jnp.log(p), -100.0)
                     + (1.0 - t) * jnp.maximum(jnp.log1p(-p), -100.0)))
    return bce + dice


if __name__ == "__main__":
    key = jax.random.PRNGKey(0)
    ks = jax.random.split(key, 6)

    # Primary test: NCHW logits + binary segmentation masks (aligned,
    # single-tile fast path, no mask).
    x = jax.random.normal(ks[0], (2, 4, 16, 16), dtype=jnp.float32)
    y = (jax.random.uniform(ks[1], (2, 4, 16, 16)) > 0.5).astype(jnp.float32)
    loss = jax.block_until_ready(dice_bce_loss(x, y, 1.0))
    ref = jax.block_until_ready(_reference(x, y, 1.0))
    assert np.allclose(np.asarray(loss), np.asarray(ref),
                       rtol=1e-4, atol=1e-5), (loss, ref)

    # Multi-tile grid with a partial boundary tile (and the 2-TC parallel
    # axis on megacore-style chips): rows = 4160 > one 4096-row block.
    x2 = jax.random.normal(ks[2], (1, 8, 520, 128), dtype=jnp.float32)
    y2 = (jax.random.uniform(ks[3], (1, 8, 520, 128)) > 0.5).astype(jnp.float32)
    loss2 = jax.block_until_ready(dice_bce_loss(x2, y2, 1.0))
    ref2 = jax.block_until_ready(_reference(x2, y2, 1.0))
    assert np.allclose(np.asarray(loss2), np.asarray(ref2),
                       rtol=1e-4, atol=1e-5), (loss2, ref2)

    # Non-128-aligned element count (pad path) + bool targets (bf16 stream).
    x3 = jax.random.normal(ks[4], (3, 5, 7, 11), dtype=jnp.float32)
    y3 = jax.random.uniform(ks[5], (3, 5, 7, 11)) > 0.5
    loss3 = jax.block_until_ready(dice_bce_loss(x3, y3))
    ref3 = jax.block_until_ready(_reference(x3, y3.astype(jnp.float32)))
    assert np.allclose(np.asarray(loss3), np.asarray(ref3),
                       rtol=1e-4, atol=1e-5), (loss3, ref3)

    print("KERNEL_OK")
</pallas_src>

<mosaic_0001>
module attributes {stable_mosaic.version = 11 : i64} {
  func.func @kernel(%arg0: i32, %arg1: i32, %arg2: memref<16x128xf32, #tpu.memory_space<vmem>>, %arg3: memref<16x128xf32, #tpu.memory_space<vmem>>, %arg4: memref<1x3x8x128xf32, #tpu.memory_space<vmem>>, %arg5: memref<8x128xf32, #tpu.memory_space<vmem>>, %arg6: memref<8x128xf32, #tpu.memory_space<vmem>>, %arg7: memref<8x128xf32, #tpu.memory_space<vmem>>) attributes {dimension_semantics = [#tpu.dimension_semantics<parallel>, #tpu.dimension_semantics<arbitrary>], iteration_bounds = array<i64: 1, 1>, scalar_prefetch = 0 : i64, scratch_operands = 3 : i64, tpu.core_type = #tpu.core_type<tc>, window_params = [{transform_indices = @transform_0, window_bounds = array<i64: 16, 128>}, {transform_indices = @transform_1, window_bounds = array<i64: 16, 128>}, {transform_indices = @transform_2, window_bounds = array<i64: 1, 3, 8, 128>}]} {
    %c0_i32 = arith.constant 0 : i32
    %0 = arith.cmpi eq, %arg1, %c0_i32 : i32
    %1 = arith.extui %0 : i1 to i32
    %c0_i32_0 = arith.constant 0 : i32
    %2 = arith.cmpi ne, %1, %c0_i32_0 : i32
    scf.if %2 {
      %cst_27 = arith.constant 0.000000e+00 : f32
      %50 = vector.broadcast %cst_27 : f32 to vector<8x128xf32>
      %c0_28 = arith.constant 0 : index
      %c0_29 = arith.constant 0 : index
      %51 = vector.load %arg5[%c0_28, %c0_29] : memref<8x128xf32, #tpu.memory_space<vmem>>, vector<8x128xf32>
      tpu.vector_store %arg5[%c0_28, %c0_29], %50 {strides = array<i32>} : memref<8x128xf32, #tpu.memory_space<vmem>>, vector<8x128xf32>,
      %cst_30 = arith.constant 0.000000e+00 : f32
      %52 = vector.broadcast %cst_30 : f32 to vector<8x128xf32>
      %c0_31 = arith.constant 0 : index
      %c0_32 = arith.constant 0 : index
      %53 = vector.load %arg6[%c0_31, %c0_32] : memref<8x128xf32, #tpu.memory_space<vmem>>, vector<8x128xf32>
      tpu.vector_store %arg6[%c0_31, %c0_32], %52 {strides = array<i32>} : memref<8x128xf32, #tpu.memory_space<vmem>>, vector<8x128xf32>,
      %cst_33 = arith.constant 0.000000e+00 : f32
      %54 = vector.broadcast %cst_33 : f32 to vector<8x128xf32>
      %c0_34 = arith.constant 0 : index
      %c0_35 = arith.constant 0 : index
      %55 = vector.load %arg7[%c0_34, %c0_35] : memref<8x128xf32, #tpu.memory_space<vmem>>, vector<8x128xf32>
      tpu.vector_store %arg7[%c0_34, %c0_35], %54 {strides = array<i32>} : memref<8x128xf32, #tpu.memory_space<vmem>>, vector<8x128xf32>,
    } else {
    }
    %c0 = arith.constant 0 : index
    %c0_1 = arith.constant 0 : index
    %3 = vector.load %arg2[%c0, %c0_1] : memref<16x128xf32, #tpu.memory_space<vmem>>, vector<16x128xf32>
    %c0_2 = arith.constant 0 : index
    %c0_3 = arith.constant 0 : index
    %4 = vector.load %arg3[%c0_2, %c0_3] : memref<16x128xf32, #tpu.memory_space<vmem>>, vector<16x128xf32>
    %cst = arith.constant 0.000000e+00 : f32
    %5 = vector.broadcast %cst : f32 to vector<16x128xf32>
    %6 = arith.maximumf %3, %5 : vector<16x128xf32>
    %7 = arith.subf %3, %6 : vector<16x128xf32>
    %8 = arith.subf %7, %6 : vector<16x128xf32>
    %9 = math.exp %8 : vector<16x128xf32>
    %10 = math.log1p %9 : vector<16x128xf32>
    %11 = arith.addf %6, %10 : vector<16x128xf32>
    %cst_4 = arith.constant 0.000000e+00 : f32
    %12 = vector.broadcast %cst_4 : f32 to vector<16x128xf32>
    %13 = arith.subf %12, %11 : vector<16x128xf32>
    %cst_5 = arith.constant -1.000000e+02 : f32
    %14 = vector.broadcast %cst_5 : f32 to vector<16x128xf32>
    %15 = arith.maximumf %13, %14 : vector<16x128xf32>
    %16 = arith.subf %3, %6 : vector<16x128xf32>
    %17 = arith.subf %16, %10 : vector<16x128xf32>
    %cst_6 = arith.constant -1.000000e+02 : f32
    %18 = vector.broadcast %cst_6 : f32 to vector<16x128xf32>
    %19 = arith.maximumf %17, %18 : vector<16x128xf32>
    %cst_7 = arith.constant 0.000000e+00 : f32
    %20 = vector.broadcast %cst_7 : f32 to vector<16x128xf32>
    %21 = arith.cmpf oge, %3, %20 : vector<16x128xf32>
    %cst_8 = arith.constant 1.000000e+00 : f32
    %22 = vector.broadcast %cst_8 : f32 to vector<16x128xf32>
    %23 = arith.select %21, %22, %9 : vector<16x128xi1>, vector<16x128xf32>
    %cst_9 = arith.constant 1.000000e+00 : f32
    %24 = vector.broadcast %cst_9 : f32 to vector<16x128xf32>
    %25 = arith.addf %24, %9 : vector<16x128xf32>
    %26 = arith.divf %23, %25 : vector<16x128xf32>
    %27 = arith.subf %19, %15 : vector<16x128xf32>
    %28 = arith.mulf %4, %27 : vector<16x128xf32>
    %29 = arith.addf %15, %28 : vector<16x128xf32>
    %c0_10 = arith.constant 0 : index
    %c0_11 = arith.constant 0 : index
    %30 = vector.load %arg5[%c0_10, %c0_11] : memref<8x128xf32, #tpu.memory_space<vmem>>, vector<8x128xf32>
    %31 = arith.addf %26, %4 : vector<16x128xf32>
    %32 = vector.shape_cast %31 : vector<16x128xf32> to vector<2x8x128xf32>
    %cst_12 = arith.constant dense<0.000000e+00> : vector<8x128xf32>
    %33 = vector.multi_reduction <add>, %32, %cst_12 [0] : vector<2x8x128xf32> to vector<8x128xf32>
    %34 = arith.addf %30, %33 : vector<8x128xf32>
    %c0_13 = arith.constant 0 : index
    %c0_14 = arith.constant 0 : index
    %35 = vector.load %arg5[%c0_13, %c0_14] : memref<8x128xf32, #tpu.memory_space<vmem>>, vector<8x128xf32>
    tpu.vector_store %arg5[%c0_13, %c0_14], %34 {strides = array<i32>} : memref<8x128xf32, #tpu.memory_space<vmem>>, vector<8x128xf32>,
    %c0_15 = arith.constant 0 : index
    %c0_16 = arith.constant 0 : index
    %36 = vector.load %arg6[%c0_15, %c0_16] : memref<8x128xf32, #tpu.memory_space<vmem>>, vector<8x128xf32>
    %37 = arith.mulf %26, %4 : vector<16x128xf32>
    %38 = vector.shape_cast %37 : vector<16x128xf32> to vector<2x8x128xf32>
    %cst_17 = arith.constant dense<0.000000e+00> : vector<8x128xf32>
    %39 = vector.multi_reduction <add>, %38, %cst_17 [0] : vector<2x8x128xf32> to vector<8x128xf32>
    %40 = arith.addf %36, %39 : vector<8x128xf32>
    %c0_18 = arith.constant 0 : index
    %c0_19 = arith.constant 0 : index
    %41 = vector.load %arg6[%c0_18, %c0_19] : memref<8x128xf32, #tpu.memory_space<vmem>>, vector<8x128xf32>
    tpu.vector_store %arg6[%c0_18, %c0_19], %40 {strides = array<i32>} : memref<8x128xf32, #tpu.memory_space<vmem>>, vector<8x128xf32>,
    %c0_20 = arith.constant 0 : index
    %c0_21 = arith.constant 0 : index
    %42 = vector.load %arg7[%c0_20, %c0_21] : memref<8x128xf32, #tpu.memory_space<vmem>>, vector<8x128xf32>
    %43 = vector.shape_cast %29 : vector<16x128xf32> to vector<2x8x128xf32>
    %cst_22 = arith.constant dense<0.000000e+00> : vector<8x128xf32>
    %44 = vector.multi_reduction <add>, %43, %cst_22 [0] : vector<2x8x128xf32> to vector<8x128xf32>
    %45 = arith.addf %42, %44 : vector<8x128xf32>
    %c0_23 = arith.constant 0 : index
    %c0_24 = arith.constant 0 : index
    %46 = vector.load %arg7[%c0_23, %c0_24] : memref<8x128xf32, #tpu.memory_space<vmem>>, vector<8x128xf32>
    tpu.vector_store %arg7[%c0_23, %c0_24], %45 {strides = array<i32>} : memref<8x128xf32, #tpu.memory_space<vmem>>, vector<8x128xf32>,
    %c0_i32_25 = arith.constant 0 : i32
    %47 = arith.cmpi eq, %arg1, %c0_i32_25 : i32
    %48 = arith.extui %47 : i1 to i32
    %c0_i32_26 = arith.constant 0 : i32
    %49 = arith.cmpi ne, %48, %c0_i32_26 : i32
    scf.if %49 {
      %c0_27 = arith.constant 0 : index
      %c0_28 = arith.constant 0 : index
      %50 = vector.load %arg5[%c0_27, %c0_28] : memref<8x128xf32, #tpu.memory_space<vmem>>, vector<8x128xf32>
      %c0_29 = arith.constant 0 : index
      %c0_30 = arith.constant 0 : index
      %c0_31 = arith.constant 0 : index
      %c0_32 = arith.constant 0 : index
      %51 = vector.load %arg4[%c0_29, %c0_30, %c0_31, %c0_32] : memref<1x3x8x128xf32, #tpu.memory_space<vmem>>, vector<1x1x8x128xf32>
      %52 = vector.shape_cast %51 : vector<1x1x8x128xf32> to vector<8x128xf32>
      %53 = vector.shape_cast %50 : vector<8x128xf32> to vector<1x1x8x128xf32>
      tpu.vector_store %arg4[%c0_29, %c0_30, %c0_31, %c0_32], %53 {strides = array<i32>} : memref<1x3x8x128xf32, #tpu.memory_space<vmem>>, vector<1x1x8x128xf32>,
      %c0_33 = arith.constant 0 : index
      %c0_34 = arith.constant 0 : index
      %54 = vector.load %arg6[%c0_33, %c0_34] : memref<8x128xf32, #tpu.memory_space<vmem>>, vector<8x128xf32>
      %c0_35 = arith.constant 0 : index
      %c1 = arith.constant 1 : index
      %c0_36 = arith.constant 0 : index
      %c0_37 = arith.constant 0 : index
      %55 = vector.load %arg4[%c0_35, %c1, %c0_36, %c0_37] : memref<1x3x8x128xf32, #tpu.memory_space<vmem>>, vector<1x1x8x128xf32>
      %56 = vector.shape_cast %55 : vector<1x1x8x128xf32> to vector<8x128xf32>
      %57 = vector.shape_cast %54 : vector<8x128xf32> to vector<1x1x8x128xf32>
      tpu.vector_store %arg4[%c0_35, %c1, %c0_36, %c0_37], %57 {strides = array<i32>} : memref<1x3x8x128xf32, #tpu.memory_space<vmem>>, vector<1x1x8x128xf32>,
      %c0_38 = arith.constant 0 : index
      %c0_39 = arith.constant 0 : index
      %58 = vector.load %arg7[%c0_38, %c0_39] : memref<8x128xf32, #tpu.memory_space<vmem>>, vector<8x128xf32>
      %c0_40 = arith.constant 0 : index
      %c2 = arith.constant 2 : index
      %c0_41 = arith.constant 0 : index
      %c0_42 = arith.constant 0 : index
      %59 = vector.load %arg4[%c0_40, %c2, %c0_41, %c0_42] : memref<1x3x8x128xf32, #tpu.memory_space<vmem>>, vector<1x1x8x128xf32>
      %60 = vector.shape_cast %59 : vector<1x1x8x128xf32> to vector<8x128xf32>
      %61 = vector.shape_cast %58 : vector<8x128xf32> to vector<1x1x8x128xf32>
      tpu.vector_store %arg4[%c0_40, %c2, %c0_41, %c0_42], %61 {strides = array<i32>} : memref<1x3x8x128xf32, #tpu.memory_space<vmem>>, vector<1x1x8x128xf32>,
    } else {
    }
    return
  }
  func.func @transform_0(%arg0: i32, %arg1: i32) -> (i32, i32) {
    %c1_i32 = arith.constant 1 : i32
    %0 = arith.muli %arg0, %c1_i32 : i32
    %1 = arith.addi %0, %arg1 : i32
    %c0_i32 = arith.constant 0 : i32
    %2 = arith.minsi %1, %c0_i32 : i32
    %c0_i32_0 = arith.constant 0 : i32
    %c0_i32_1 = arith.constant 0 : i32
    return %2, %c0_i32_0 : i32, i32
  }
  func.func @transform_1(%arg0: i32, %arg1: i32) -> (i32, i32) {
    %c1_i32 = arith.constant 1 : i32
    %0 = arith.muli %arg0, %c1_i32 : i32
    %1 = arith.addi %0, %arg1 : i32
    %c0_i32 = arith.constant 0 : i32
    %2 = arith.minsi %1, %c0_i32 : i32
    %c0_i32_0 = arith.constant 0 : i32
    %c0_i32_1 = arith.constant 0 : i32
    return %2, %c0_i32_0 : i32, i32
  }
  func.func @transform_2(%arg0: i32, %arg1: i32) -> (i32, i32, i32, i32) {
    %c0_i32 = arith.constant 0 : i32
    %c0_i32_0 = arith.constant 0 : i32
    %c0_i32_1 = arith.constant 0 : i32
    %c0_i32_2 = arith.constant 0 : i32
    return %arg0, %c0_i32, %c0_i32_0, %c0_i32_1 : i32, i32, i32, i32
  }
}

</mosaic_0001>

<bundles_post_ra>
// kernel: dice_bce_loss.1
= control target key start
LH: loop header
LB: loop body
LE: loop exit
PB: predicated region body
PF: predicated region fallthrough
CT: control target
= control target key end

     0   :  { %s233_s0 = inlined_call_operand.vmem [shape: f32[16,128], index: 0, kind: input, shape index: {}]   ;;  %s234_s1 = inlined_call_operand.vmem [shape: f32[16,128], index: 1, kind: input, shape index: {}]   ;;  %s235_s2 = inlined_call_operand.vmem [shape: f32[1,3,8,128], index: 2, kind: output, shape index: {}]  }
   0x1   :  { %v82_v0 = vld [vmem:[%s233_s0] sm:$0xff]  ;;  %v83_v1 = vld [vmem:[%s233_s0 + $0x8] sm:$0xff] }
   0x2   :  { %v86_v2 = vmax.f32 %v82_v0, 0.0  ;;  %v87_v3 = vmax.f32 %v83_v1, 0.0  ;;  %vm124_vm0 = vcmp.ge.f32.partialorder %v82_v0, 0.0  ;;  %vm125_vm1 = vcmp.ge.f32.partialorder %v83_v1, 0.0  ;;  %v84_v27 = vld [vmem:[%s234_s1] sm:$0xff]  ;;  %v85_v31 = vld [vmem:[%s234_s1 + $0x8] sm:$0xff] }
   0x4   :  { %v88_v4 = vsub.f32 %v82_v0, %v86_v2  ;;  %v89_v5 = vsub.f32 %v83_v1, %v87_v3 }
   0x6   :  { %v90_v6 = vsub.f32 %v88_v4, %v86_v2  ;;  %v91_v7 = vsub.f32 %v89_v5, %v87_v3 }
   0x8   :  { %v92_v8 = vmul.f32 1.442695, %v90_v6  ;;  %v94_v9 = vmul.f32 1.442695, %v91_v7 }
   0xa   :  { %185 = vpow2.f32 %v92_v8 }
   0xb   :  { %187 = vpow2.f32 %v94_v9 }
  0x14   :  { %v186_v10 = vpop.eup %185 }
  0x15   :  { %v188_v11 = vpop.eup %187  ;;  %v96_v12 = vadd.f32 1.0, %v186_v10  ;;  %v99_v14 = vmul.f32 -0.5, %v186_v10  ;;  %v126_v17 = vsel %vm124_vm0, 1.0, %v186_v10  ;;  %v102_v18 = vand.u32 2147483647, %v186_v10 }
  0x16   :  { %v105_v13 = vadd.f32 1.0, %v188_v11  ;;  %v108_v15 = vmul.f32 -0.5, %v188_v11  ;;  %v127_v20 = vsel %vm125_vm1, 1.0, %v188_v11  ;;  %v111_v21 = vand.u32 2147483647, %v188_v11 }
  0x17   :  { %189 = vrcp.f32 %v96_v12  ;;  %v100_v16 = vadd.f32 1.0, %v99_v14  ;;  %vm103_vm2 = vcmp.lt.f32.partialorder %v102_v18, 0.0004427343 }
  0x18   :  { %191 = vrcp.f32 %v105_v13  ;;  %v109_v19 = vadd.f32 1.0, %v108_v15  ;;  %vm112_vm3 = vcmp.lt.f32.partialorder %v111_v21, 0.0004427343 }
  0x19   :  { %193 = vlog2.f32 %v96_v12  ;;  %v101_v25 = vmul.f32 %v186_v10, %v100_v16 }
  0x1a   :  { %195 = vlog2.f32 %v105_v13  ;;  %v110_v29 = vmul.f32 %v188_v11, %v109_v19 }
  0x21   :  { %v190_v22 = vpop.eup %189 }
  0x22   :  { %v192_v23 = vpop.eup %191  ;;  %v131_v24 = vmul.f32 %v190_v22, %v126_v17 }
  0x23   :  { %v194_v26 = vpop.eup %193  ;;  %v133_v28 = vmul.f32 %v192_v23, %v127_v20 }
  0x24   :  { %v196_v30 = vpop.eup %195  ;;  %v141_v32 = vadd.f32 %v131_v24, %v84_v27  ;;  %v147_v33 = vmul.f32 %v131_v24, %v84_v27  ;;  %v98_v34 = vmul.f32 0.6931472, %v194_v26 }
  0x25   :  { %v142_v35 = vadd.f32 %v133_v28, %v85_v31  ;;  %v148_v36 = vmul.f32 %v133_v28, %v85_v31  ;;  %v107_v37 = vmul.f32 0.6931472, %v196_v30 }
  0x26   :  { %v104_v38 = vsel %vm103_vm2, %v101_v25, %v98_v34 }
  0x27   :  { %v143_v39 = vadd.f32 %v142_v35, %v141_v32  ;;  %v149_v40 = vadd.f32 %v148_v36, %v147_v33  ;;  %v113_v41 = vsel %vm112_vm3, %v110_v29, %v107_v37  ;;  %v114_v42 = vadd.f32 %v104_v38, %v86_v2 }
  0x28   :  { %v115_v43 = vadd.f32 %v113_v41, %v87_v3  ;;  %v120_v44 = vsub.f32 %v88_v4, %v104_v38  ;;  %v121_v45 = vsub.f32 %v89_v5, %v113_v41 }
  0x29   :  { %160 = vst [vmem:[%s235_s2] sm:$0xff] %v143_v39  ;;  %183 = vst [vmem:[%s235_s2 + $0x8] sm:$0xff] %v149_v40  ;;  %v116_v46 = vsub.f32 0.0, %v114_v42 }
  0x2a   :  { %v117_v47 = vsub.f32 0.0, %v115_v43  ;;  %v122_v48 = vmax.f32 %v120_v44, -100.0  ;;  %v123_v49 = vmax.f32 %v121_v45, -100.0 }
  0x2b   :  { %v118_v50 = vmax.f32 %v116_v46, -100.0 }
  0x2c   :  { %v119_v51 = vmax.f32 %v117_v47, -100.0 }
  0x2d   :  { %v134_v52 = vsub.f32 %v122_v48, %v118_v50 }
  0x2e   :  { %v135_v53 = vsub.f32 %v123_v49, %v119_v51 }
  0x2f   :  { %v136_v54 = vmul.f32 %v134_v52, %v84_v27 }
  0x30   :  { %v137_v55 = vmul.f32 %v135_v53, %v85_v31 }
  0x31   :  { %v138_v56 = vadd.f32 %v136_v54, %v118_v50 }
  0x32   :  { %v139_v57 = vadd.f32 %v137_v55, %v119_v51 }
  0x34   :  { %v153_v58 = vadd.f32 %v139_v57, %v138_v56 }
  0x36   :  { %184 = vst [vmem:[%s235_s2 + $0x10] sm:$0xff] %v153_v58 }

</bundles_post_ra>
